<compile_context>
chip_gen: v7x
topology: tpu7x:2x2x1
jax: 0.10.0
libtpu: 0.0.40
codegen_flags: <defaults>
</compile_context>

<pallas_src>
import functools

import jax
import jax.numpy as jnp
from jax.experimental import pallas as pl
from jax.experimental.pallas import tpu as pltpu

EPS = 1e-5
NEG_SLOPE = 0.01

IN_FEATURES = 28 * 28   # 784
H1 = 1
H2 = 8
OUT_FEATURES = 10

MAX_TILE_B = 2048       # 2048 rows * 784 * 4B ~= 6.4 MB per x buffer (x2 dbl-buf)


def _leaky_relu(x):
    return jnp.where(x > 0, x, NEG_SLOPE * x)


def _round_up(v, m):
    return ((v + m - 1) // m) * m


def model3_kernel(
    x_ref,
    w1_ref, b1_ref, g1_ref, be1_ref,
    w2_ref, b2_ref, g2_ref, be2_ref,
    w3_ref, b3_ref,
    o_ref,
    h1_scratch, s1_ref, t1_ref, c1_ref, c0_ref,
    *, batch_size, tile_b,
):
    p = pl.program_id(0)   # phase: 0 = layer-1 streaming pass, 1 = epilogue pass
    i = pl.program_id(1)   # batch tile index

    # ---------------- phase 0: layer-1 matmul on this x tile ----------------
    @pl.when(p == 0)
    def _():
        x = x_ref[...]                                              # (tile_b, 784) f32
        h1 = jnp.dot(x, w1_ref[...],
                     preferred_element_type=jnp.float32) + b1_ref[...]
        start = pl.multiple_of(i * tile_b, tile_b)
        h1_scratch[pl.ds(start, tile_b), :] = h1                    # resident in VMEM

    # ------- phase 1, first step: exact full-batch BN stats (two-pass) -------
    @pl.when(jnp.logical_and(p == 1, i == 0))
    def _():
        inv_b = 1.0 / batch_size
        h1_all = h1_scratch[...]                                    # (b_pad, 1)
        rows = jax.lax.broadcasted_iota(jnp.int32, h1_all.shape, 0)
        mask = rows < batch_size                                    # ignore padded rows

        # BN1: exact two-pass mean / biased variance (PyTorch training mode).
        mean1 = jnp.sum(jnp.where(mask, h1_all, 0.0), axis=0, keepdims=True) * inv_b
        d1 = jnp.where(mask, h1_all - mean1, 0.0)
        var1 = jnp.sum(d1 * d1, axis=0, keepdims=True) * inv_b
        inv_std1 = jax.lax.rsqrt(var1 + EPS)
        s1 = inv_std1 * g1_ref[...]                                 # (1, 1)
        t1 = be1_ref[...] - mean1 * s1
        s1_ref[...] = s1
        t1_ref[...] = t1

        # BN2 stats via the affine identity: h2[:, j] = a1 * w2[j] + b2[j]
        #   mean(h2[:, j]) = mean(a1) * w2[j] + b2[j]
        #   var (h2[:, j]) = var(a1)  * w2[j]^2          (exact in real math)
        a1_all = _leaky_relu(h1_all * s1 + t1)                      # (b_pad, 1)
        mean_a1 = jnp.sum(jnp.where(mask, a1_all, 0.0),
                          axis=0, keepdims=True) * inv_b
        da = jnp.where(mask, a1_all - mean_a1, 0.0)
        var_a1 = jnp.sum(da * da, axis=0, keepdims=True) * inv_b

        w2 = w2_ref[...]                                            # (1, 8)
        b2 = b2_ref[...]
        mean2 = mean_a1 * w2 + b2
        var2 = var_a1 * (w2 * w2)
        inv_std2 = jax.lax.rsqrt(var2 + EPS)
        g2 = g2_ref[...]
        # Folded layer-2 + BN2 affine:  a2_pre = a1 * c1 + c0
        c1_ref[...] = w2 * inv_std2 * g2
        c0_ref[...] = (b2 - mean2) * inv_std2 * g2 + be2_ref[...]

    # -------- phase 1: per-tile epilogue, one output block per step --------
    @pl.when(p == 1)
    def _():
        start = pl.multiple_of(i * tile_b, tile_b)
        h1_t = h1_scratch[pl.ds(start, tile_b), :]                  # (tile_b, 1)
        a1 = _leaky_relu(h1_t * s1_ref[...] + t1_ref[...])          # (tile_b, 1)
        # Linear(1,8)+BN2 folded into one VPU broadcast multiply-add (no K=1 MXU).
        a2 = _leaky_relu(a1 * c1_ref[...] + c0_ref[...])            # (tile_b, 8)
        out = jnp.dot(a2, w3_ref[...],
                      preferred_element_type=jnp.float32) + b3_ref[...]
        o_ref[...] = out.astype(o_ref.dtype)                        # (tile_b, 10)


def model_3_forward(x_nchw, params, *, max_tile_b=MAX_TILE_B):
    B = x_nchw.shape[0]
    x = x_nchw.reshape(B, -1).astype(jnp.float32)                   # == x.view(B, -1)

    # Batch tile: multiple of 8, at most max_tile_b; pad B up to a multiple.
    tb = min(_round_up(max_tile_b, 8), _round_up(B, 8))
    n_tiles = pl.cdiv(B, tb)
    b_pad = n_tiles * tb
    if b_pad != B:
        x = jnp.pad(x, ((0, b_pad - B), (0, 0)))

    (w1, b1, g1, be1, w2, b2, g2, be2, w3, b3) = params
    operands = (x, w1, b1, g1, be1, w2, b2, g2, be2, w3, b3)

    def resident(arr):
        # Full-array block with a constant block index -> stays in VMEM, no re-DMA.
        return pl.BlockSpec(arr.shape, lambda p, i: (0, 0))

    # x: streamed tile-by-tile in phase 0; in phase 1 pin the last phase-0 tile
    # so the block index never changes -> zero re-DMA across the phase boundary.
    def x_map(p, i):
        return (i * (1 - p) + (n_tiles - 1) * p, 0)

    # output: pinned to block 0 during phase 0 (never written there, so no
    # garbage writeback); per-tile block i during phase 1.
    def out_map(p, i):
        return (i * p, 0)

    kernel = functools.partial(model3_kernel, batch_size=B, tile_b=tb)

    flops = 2 * B * (IN_FEATURES * H1 + H1 * H2 + H2 * OUT_FEATURES)
    param_bytes = sum(int(pm.size) * 4 for pm in operands[1:])
    bytes_accessed = b_pad * IN_FEATURES * 4 + b_pad * OUT_FEATURES * 4 + param_bytes

    # VMEM budget: x double-buffer + output double-buffer (lane-padded to 128)
    # + resident h1 scratch (512 B per padded row) + margin.
    vmem_need = (2 * tb * IN_FEATURES * 4) + (2 * tb * 128 * 4) + b_pad * 512 + (4 << 20)
    vmem_limit = int(min(max(32 << 20, vmem_need), 120 << 20))

    out = pl.pallas_call(
        kernel,
        out_shape=jax.ShapeDtypeStruct((b_pad, OUT_FEATURES), jnp.float32),
        grid_spec=pltpu.PrefetchScalarGridSpec(
            num_scalar_prefetch=0,
            grid=(2, n_tiles),                                     # (phase, batch tile)
            in_specs=[
                pl.BlockSpec((tb, IN_FEATURES), x_map),            # x: streamed/tiled
                resident(w1), resident(b1), resident(g1), resident(be1),
                resident(w2), resident(b2), resident(g2), resident(be2),
                resident(w3), resident(b3),
            ],
            out_specs=pl.BlockSpec((tb, OUT_FEATURES), out_map),
            scratch_shapes=[
                pltpu.VMEM((b_pad, H1), jnp.float32),   # resident h1
                pltpu.VMEM((1, H1), jnp.float32),       # folded BN1 scale
                pltpu.VMEM((1, H1), jnp.float32),       # folded BN1 shift
                pltpu.VMEM((1, H2), jnp.float32),       # folded L2+BN2 scale
                pltpu.VMEM((1, H2), jnp.float32),       # folded L2+BN2 shift
            ],
        ),
        compiler_params=pltpu.CompilerParams(
            # Cross-tile dependency through the resident h1 scratch and the
            # sequential phase structure -> both axes must be sequential.
            dimension_semantics=("arbitrary", "arbitrary"),
            vmem_limit_bytes=vmem_limit,
        ),
        cost_estimate=pl.CostEstimate(
            flops=flops, transcendentals=0, bytes_accessed=bytes_accessed),
    )(*operands)

    return out[:B, :]


def model_3_reference(x_nchw, params):
    """Pure-JAX reference mirroring PyTorch model_3 in training-mode BN."""
    (w1, b1, g1, be1, w2, b2, g2, be2, w3, b3) = params
    x = x_nchw.reshape(x_nchw.shape[0], -1).astype(jnp.float32)

    def bn(h, g, be):
        m = jnp.mean(h, axis=0, keepdims=True)
        v = jnp.var(h, axis=0, keepdims=True)          # biased, like PyTorch training
        return (h - m) / jnp.sqrt(v + EPS) * g + be

    h1 = x @ w1 + b1
    a1 = _leaky_relu(bn(h1, g1, be1))
    h2 = a1 @ w2 + b2
    a2 = _leaky_relu(bn(h2, g2, be2))
    return a2 @ w3 + b3


def init_params(key):
    """Deterministic parameter init (shapes from model_3.__init__)."""
    ks = jax.random.split(key, 6)

    def linear(kw, kb, fan_in, fan_out):
        bound = 1.0 / float(jnp.sqrt(fan_in))
        # stored transposed: (in, out) so the kernel does x @ W
        w = jax.random.uniform(kw, (fan_in, fan_out), jnp.float32, -bound, bound)
        b = jax.random.uniform(kb, (1, fan_out), jnp.float32, -bound, bound)
        return w, b

    w1, b1 = linear(ks[0], ks[1], IN_FEATURES, H1)
    w2, b2 = linear(ks[2], ks[3], H1, H2)
    w3, b3 = linear(ks[4], ks[5], H2, OUT_FEATURES)

    # BatchNorm affine params (PyTorch default init: gamma=1, beta=0)
    g1, be1 = jnp.ones((1, H1), jnp.float32), jnp.zeros((1, H1), jnp.float32)
    g2, be2 = jnp.ones((1, H2), jnp.float32), jnp.zeros((1, H2), jnp.float32)

    return (w1, b1, g1, be1, w2, b2, g2, be2, w3, b3)


if __name__ == "__main__":
    key = jax.random.PRNGKey(0)
    k_x, k_p = jax.random.split(key)

    B = 8
    x = jax.random.normal(k_x, (B, 1, 28, 28), jnp.float32)         # NCHW, like MNIST
    params = init_params(k_p)

    out = model_3_forward(x, params)
    jax.block_until_ready(out)

    assert out.shape == (B, 10) and out.dtype == jnp.float32

    ref = model_3_reference(x, params)
    assert jnp.allclose(out, ref, rtol=2e-4, atol=2e-4), (
        f"max abs err {float(jnp.max(jnp.abs(out - ref)))}")

    print("KERNEL_OK")
</pallas_src>

<mosaic_0001>
module attributes {stable_mosaic.version = 11 : i64} {
  func.func @model3_kernel(%arg0: i32, %arg1: i32, %arg2: memref<8x784xf32, #tpu.memory_space<vmem>>, %arg3: memref<784x1xf32, #tpu.memory_space<vmem>>, %arg4: memref<1x1xf32, #tpu.memory_space<vmem>>, %arg5: memref<1x1xf32, #tpu.memory_space<vmem>>, %arg6: memref<1x1xf32, #tpu.memory_space<vmem>>, %arg7: memref<1x8xf32, #tpu.memory_space<vmem>>, %arg8: memref<1x8xf32, #tpu.memory_space<vmem>>, %arg9: memref<1x8xf32, #tpu.memory_space<vmem>>, %arg10: memref<1x8xf32, #tpu.memory_space<vmem>>, %arg11: memref<8x10xf32, #tpu.memory_space<vmem>>, %arg12: memref<1x10xf32, #tpu.memory_space<vmem>>, %arg13: memref<8x10xf32, #tpu.memory_space<vmem>>, %arg14: memref<8x1xf32, #tpu.memory_space<vmem>>, %arg15: memref<1x1xf32, #tpu.memory_space<vmem>>, %arg16: memref<1x1xf32, #tpu.memory_space<vmem>>, %arg17: memref<1x8xf32, #tpu.memory_space<vmem>>, %arg18: memref<1x8xf32, #tpu.memory_space<vmem>>) attributes {dimension_semantics = [#tpu.dimension_semantics<arbitrary>, #tpu.dimension_semantics<arbitrary>], iteration_bounds = array<i64: 2, 1>, scalar_prefetch = 0 : i64, scratch_operands = 5 : i64, tpu.core_type = #tpu.core_type<tc>, window_params = [{transform_indices = @transform_0, window_bounds = array<i64: 8, 784>}, {pipeline_mode = #tpu.pipeline_mode<synchronous>, transform_indices = @transform_1, window_bounds = array<i64: 784, 1>}, {pipeline_mode = #tpu.pipeline_mode<synchronous>, transform_indices = @transform_2, window_bounds = array<i64: 1, 1>}, {pipeline_mode = #tpu.pipeline_mode<synchronous>, transform_indices = @transform_3, window_bounds = array<i64: 1, 1>}, {pipeline_mode = #tpu.pipeline_mode<synchronous>, transform_indices = @transform_4, window_bounds = array<i64: 1, 1>}, {pipeline_mode = #tpu.pipeline_mode<synchronous>, transform_indices = @transform_5, window_bounds = array<i64: 1, 8>}, {pipeline_mode = #tpu.pipeline_mode<synchronous>, transform_indices = @transform_6, window_bounds = array<i64: 1, 8>}, {pipeline_mode = #tpu.pipeline_mode<synchronous>, transform_indices = @transform_7, window_bounds = array<i64: 1, 8>}, {pipeline_mode = #tpu.pipeline_mode<synchronous>, transform_indices = @transform_8, window_bounds = array<i64: 1, 8>}, {pipeline_mode = #tpu.pipeline_mode<synchronous>, transform_indices = @transform_9, window_bounds = array<i64: 8, 10>}, {pipeline_mode = #tpu.pipeline_mode<synchronous>, transform_indices = @transform_10, window_bounds = array<i64: 1, 10>}, {transform_indices = @transform_11, window_bounds = array<i64: 8, 10>}]} {
    %c0_i32 = arith.constant 0 : i32
    %0 = arith.cmpi eq, %arg0, %c0_i32 : i32
    %1 = arith.extui %0 : i1 to i32
    %c0_i32_0 = arith.constant 0 : i32
    %2 = arith.cmpi ne, %1, %c0_i32_0 : i32
    scf.if %2 {
      %c0 = arith.constant 0 : index
      %c0_5 = arith.constant 0 : index
      %11 = vector.load %arg2[%c0, %c0_5] : memref<8x784xf32, #tpu.memory_space<vmem>>, vector<8x784xf32>
      %c0_6 = arith.constant 0 : index
      %c0_7 = arith.constant 0 : index
      %12 = vector.load %arg3[%c0_6, %c0_7] : memref<784x1xf32, #tpu.memory_space<vmem>>, vector<784x1xf32>
      %cst = arith.constant dense<0.000000e+00> : vector<8x1xf32>
      %13 = tpu.matmul %11, %12, %cst {dimension_numbers = #tpu.dot_dimension_numbers<[1], [0], [0], [1], [0, 0, 1, 1], [], []>} : vector<8x784xf32>, vector<784x1xf32>, vector<8x1xf32> -> vector<8x1xf32>
      %c0_8 = arith.constant 0 : index
      %c0_9 = arith.constant 0 : index
      %14 = vector.load %arg4[%c0_8, %c0_9] : memref<1x1xf32, #tpu.memory_space<vmem>>, vector<1x1xf32>
      %15 = vector.broadcast %14 : vector<1x1xf32> to vector<8x1xf32>
      %16 = arith.addf %13, %15 : vector<8x1xf32>
      %c8_i32 = arith.constant 8 : i32
      %17 = arith.muli %arg1, %c8_i32 : i32
      %18 = tpu.assume_multiple %17, 8 : i32
      %19 = arith.index_cast %18 : i32 to index
      %c0_10 = arith.constant 0 : index
      %20 = vector.load %arg14[%19, %c0_10] : memref<8x1xf32, #tpu.memory_space<vmem>>, vector<8x1xf32>
      tpu.vector_store %arg14[%19, %c0_10], %16 {strides = array<i32>} : memref<8x1xf32, #tpu.memory_space<vmem>>, vector<8x1xf32>,
    } else {
    }
    %c1_i32 = arith.constant 1 : i32
    %3 = arith.cmpi eq, %arg0, %c1_i32 : i32
    %c0_i32_1 = arith.constant 0 : i32
    %4 = arith.cmpi eq, %arg1, %c0_i32_1 : i32
    %5 = arith.andi %3, %4 : i1
    %6 = arith.extui %5 : i1 to i32
    %c0_i32_2 = arith.constant 0 : i32
    %7 = arith.cmpi ne, %6, %c0_i32_2 : i32
    scf.if %7 {
      %c0 = arith.constant 0 : index
      %c0_5 = arith.constant 0 : index
      %11 = vector.load %arg14[%c0, %c0_5] : memref<8x1xf32, #tpu.memory_space<vmem>>, vector<8x1xf32>
      %12 = tpu.iota {dimensions = array<i32: 0>} : vector<8x1xi32>
      %c8_i32 = arith.constant 8 : i32
      %13 = vector.broadcast %c8_i32 : i32 to vector<8x1xi32>
      %14 = arith.cmpi slt, %12, %13 : vector<8x1xi32>
      %cst = arith.constant 0.000000e+00 : f32
      %15 = vector.broadcast %cst : f32 to vector<8x1xf32>
      %16 = arith.select %14, %11, %15 : vector<8x1xi1>, vector<8x1xf32>
      %cst_6 = arith.constant dense<0.000000e+00> : vector<1xf32>
      %17 = vector.multi_reduction <add>, %16, %cst_6 [0] : vector<8x1xf32> to vector<1xf32>
      %18 = vector.shape_cast %17 : vector<1xf32> to vector<1x1xf32>
      %cst_7 = arith.constant 1.250000e-01 : f32
      %19 = vector.broadcast %cst_7 : f32 to vector<1x1xf32>
      %20 = arith.mulf %18, %19 : vector<1x1xf32>
      %21 = vector.broadcast %20 : vector<1x1xf32> to vector<8x1xf32>
      %22 = arith.subf %11, %21 : vector<8x1xf32>
      %cst_8 = arith.constant 0.000000e+00 : f32
      %23 = vector.broadcast %cst_8 : f32 to vector<8x1xf32>
      %24 = arith.select %14, %22, %23 : vector<8x1xi1>, vector<8x1xf32>
      %25 = arith.mulf %24, %24 : vector<8x1xf32>
      %cst_9 = arith.constant dense<0.000000e+00> : vector<1xf32>
      %26 = vector.multi_reduction <add>, %25, %cst_9 [0] : vector<8x1xf32> to vector<1xf32>
      %27 = vector.shape_cast %26 : vector<1xf32> to vector<1x1xf32>
      %cst_10 = arith.constant 1.250000e-01 : f32
      %28 = vector.broadcast %cst_10 : f32 to vector<1x1xf32>
      %29 = arith.mulf %27, %28 : vector<1x1xf32>
      %cst_11 = arith.constant 9.99999974E-6 : f32
      %30 = vector.broadcast %cst_11 : f32 to vector<1x1xf32>
      %31 = arith.addf %29, %30 : vector<1x1xf32>
      %32 = math.rsqrt %31 : vector<1x1xf32>
      %c0_12 = arith.constant 0 : index
      %c0_13 = arith.constant 0 : index
      %33 = vector.load %arg5[%c0_12, %c0_13] : memref<1x1xf32, #tpu.memory_space<vmem>>, vector<1x1xf32>
      %34 = arith.mulf %32, %33 : vector<1x1xf32>
      %c0_14 = arith.constant 0 : index
      %c0_15 = arith.constant 0 : index
      %35 = vector.load %arg6[%c0_14, %c0_15] : memref<1x1xf32, #tpu.memory_space<vmem>>, vector<1x1xf32>
      %36 = arith.mulf %20, %34 : vector<1x1xf32>
      %37 = arith.subf %35, %36 : vector<1x1xf32>
      %c0_16 = arith.constant 0 : index
      %c0_17 = arith.constant 0 : index
      %38 = vector.load %arg15[%c0_16, %c0_17] : memref<1x1xf32, #tpu.memory_space<vmem>>, vector<1x1xf32>
      tpu.vector_store %arg15[%c0_16, %c0_17], %34 {strides = array<i32>} : memref<1x1xf32, #tpu.memory_space<vmem>>, vector<1x1xf32>,
      %c0_18 = arith.constant 0 : index
      %c0_19 = arith.constant 0 : index
      %39 = vector.load %arg16[%c0_18, %c0_19] : memref<1x1xf32, #tpu.memory_space<vmem>>, vector<1x1xf32>
      tpu.vector_store %arg16[%c0_18, %c0_19], %37 {strides = array<i32>} : memref<1x1xf32, #tpu.memory_space<vmem>>, vector<1x1xf32>,
      %40 = vector.broadcast %34 : vector<1x1xf32> to vector<8x1xf32>
      %41 = arith.mulf %11, %40 : vector<8x1xf32>
      %42 = vector.broadcast %37 : vector<1x1xf32> to vector<8x1xf32>
      %43 = arith.addf %41, %42 : vector<8x1xf32>
      %cst_20 = arith.constant 0.000000e+00 : f32
      %44 = vector.broadcast %cst_20 : f32 to vector<8x1xf32>
      %45 = arith.cmpf ogt, %43, %44 : vector<8x1xf32>
      %cst_21 = arith.constant 0.00999999977 : f32
      %46 = vector.broadcast %cst_21 : f32 to vector<8x1xf32>
      %47 = arith.mulf %46, %43 : vector<8x1xf32>
      %48 = arith.select %45, %43, %47 : vector<8x1xi1>, vector<8x1xf32>
      %cst_22 = arith.constant 0.000000e+00 : f32
      %49 = vector.broadcast %cst_22 : f32 to vector<8x1xf32>
      %50 = arith.select %14, %48, %49 : vector<8x1xi1>, vector<8x1xf32>
      %cst_23 = arith.constant dense<0.000000e+00> : vector<1xf32>
      %51 = vector.multi_reduction <add>, %50, %cst_23 [0] : vector<8x1xf32> to vector<1xf32>
      %52 = vector.shape_cast %51 : vector<1xf32> to vector<1x1xf32>
      %cst_24 = arith.constant 1.250000e-01 : f32
      %53 = vector.broadcast %cst_24 : f32 to vector<1x1xf32>
      %54 = arith.mulf %52, %53 : vector<1x1xf32>
      %55 = vector.broadcast %54 : vector<1x1xf32> to vector<8x1xf32>
      %56 = arith.subf %48, %55 : vector<8x1xf32>
      %cst_25 = arith.constant 0.000000e+00 : f32
      %57 = vector.broadcast %cst_25 : f32 to vector<8x1xf32>
      %58 = arith.select %14, %56, %57 : vector<8x1xi1>, vector<8x1xf32>
      %59 = arith.mulf %58, %58 : vector<8x1xf32>
      %cst_26 = arith.constant dense<0.000000e+00> : vector<1xf32>
      %60 = vector.multi_reduction <add>, %59, %cst_26 [0] : vector<8x1xf32> to vector<1xf32>
      %61 = vector.shape_cast %60 : vector<1xf32> to vector<1x1xf32>
      %cst_27 = arith.constant 1.250000e-01 : f32
      %62 = vector.broadcast %cst_27 : f32 to vector<1x1xf32>
      %63 = arith.mulf %61, %62 : vector<1x1xf32>
      %c0_28 = arith.constant 0 : index
      %c0_29 = arith.constant 0 : index
      %64 = vector.load %arg7[%c0_28, %c0_29] : memref<1x8xf32, #tpu.memory_space<vmem>>, vector<1x8xf32>
      %c0_30 = arith.constant 0 : index
      %c0_31 = arith.constant 0 : index
      %65 = vector.load %arg8[%c0_30, %c0_31] : memref<1x8xf32, #tpu.memory_space<vmem>>, vector<1x8xf32>
      %66 = vector.broadcast %54 : vector<1x1xf32> to vector<1x8xf32>
      %67 = arith.mulf %66, %64 : vector<1x8xf32>
      %68 = arith.addf %67, %65 : vector<1x8xf32>
      %69 = arith.mulf %64, %64 : vector<1x8xf32>
      %70 = vector.broadcast %63 : vector<1x1xf32> to vector<1x8xf32>
      %71 = arith.mulf %70, %69 : vector<1x8xf32>
      %cst_32 = arith.constant 9.99999974E-6 : f32
      %72 = vector.broadcast %cst_32 : f32 to vector<1x8xf32>
      %73 = arith.addf %71, %72 : vector<1x8xf32>
      %74 = math.rsqrt %73 : vector<1x8xf32>
      %c0_33 = arith.constant 0 : index
      %c0_34 = arith.constant 0 : index
      %75 = vector.load %arg9[%c0_33, %c0_34] : memref<1x8xf32, #tpu.memory_space<vmem>>, vector<1x8xf32>
      %76 = arith.mulf %64, %74 : vector<1x8xf32>
      %77 = arith.mulf %76, %75 : vector<1x8xf32>
      %c0_35 = arith.constant 0 : index
      %c0_36 = arith.constant 0 : index
      %78 = vector.load %arg17[%c0_35, %c0_36] : memref<1x8xf32, #tpu.memory_space<vmem>>, vector<1x8xf32>
      tpu.vector_store %arg17[%c0_35, %c0_36], %77 {strides = array<i32>} : memref<1x8xf32, #tpu.memory_space<vmem>>, vector<1x8xf32>,
      %79 = arith.subf %65, %68 : vector<1x8xf32>
      %80 = arith.mulf %79, %74 : vector<1x8xf32>
      %81 = arith.mulf %80, %75 : vector<1x8xf32>
      %c0_37 = arith.constant 0 : index
      %c0_38 = arith.constant 0 : index
      %82 = vector.load %arg10[%c0_37, %c0_38] : memref<1x8xf32, #tpu.memory_space<vmem>>, vector<1x8xf32>
      %83 = arith.addf %81, %82 : vector<1x8xf32>
      %c0_39 = arith.constant 0 : index
      %c0_40 = arith.constant 0 : index
      %84 = vector.load %arg18[%c0_39, %c0_40] : memref<1x8xf32, #tpu.memory_space<vmem>>, vector<1x8xf32>
      tpu.vector_store %arg18[%c0_39, %c0_40], %83 {strides = array<i32>} : memref<1x8xf32, #tpu.memory_space<vmem>>, vector<1x8xf32>,
    } else {
    }
    %c1_i32_3 = arith.constant 1 : i32
    %8 = arith.cmpi eq, %arg0, %c1_i32_3 : i32
    %9 = arith.extui %8 : i1 to i32
    %c0_i32_4 = arith.constant 0 : i32
    %10 = arith.cmpi ne, %9, %c0_i32_4 : i32
    scf.if %10 {
      %c8_i32 = arith.constant 8 : i32
      %11 = arith.muli %arg1, %c8_i32 : i32
      %12 = tpu.assume_multiple %11, 8 : i32
      %13 = arith.index_cast %12 : i32 to index
      %c0 = arith.constant 0 : index
      %14 = vector.load %arg14[%13, %c0] : memref<8x1xf32, #tpu.memory_space<vmem>>, vector<8x1xf32>
      %c0_5 = arith.constant 0 : index
      %c0_6 = arith.constant 0 : index
      %15 = vector.load %arg15[%c0_5, %c0_6] : memref<1x1xf32, #tpu.memory_space<vmem>>, vector<1x1xf32>
      %16 = vector.broadcast %15 : vector<1x1xf32> to vector<8x1xf32>
      %17 = arith.mulf %14, %16 : vector<8x1xf32>
      %c0_7 = arith.constant 0 : index
      %c0_8 = arith.constant 0 : index
      %18 = vector.load %arg16[%c0_7, %c0_8] : memref<1x1xf32, #tpu.memory_space<vmem>>, vector<1x1xf32>
      %19 = vector.broadcast %18 : vector<1x1xf32> to vector<8x1xf32>
      %20 = arith.addf %17, %19 : vector<8x1xf32>
      %cst = arith.constant 0.000000e+00 : f32
      %21 = vector.broadcast %cst : f32 to vector<8x1xf32>
      %22 = arith.cmpf ogt, %20, %21 : vector<8x1xf32>
      %cst_9 = arith.constant 0.00999999977 : f32
      %23 = vector.broadcast %cst_9 : f32 to vector<8x1xf32>
      %24 = arith.mulf %23, %20 : vector<8x1xf32>
      %25 = arith.select %22, %20, %24 : vector<8x1xi1>, vector<8x1xf32>
      %c0_10 = arith.constant 0 : index
      %c0_11 = arith.constant 0 : index
      %26 = vector.load %arg17[%c0_10, %c0_11] : memref<1x8xf32, #tpu.memory_space<vmem>>, vector<1x8xf32>
      %27 = vector.broadcast %25 : vector<8x1xf32> to vector<8x8xf32>
      %28 = vector.broadcast %26 : vector<1x8xf32> to vector<8x8xf32>
      %29 = arith.mulf %27, %28 : vector<8x8xf32>
      %c0_12 = arith.constant 0 : index
      %c0_13 = arith.constant 0 : index
      %30 = vector.load %arg18[%c0_12, %c0_13] : memref<1x8xf32, #tpu.memory_space<vmem>>, vector<1x8xf32>
      %31 = vector.broadcast %30 : vector<1x8xf32> to vector<8x8xf32>
      %32 = arith.addf %29, %31 : vector<8x8xf32>
      %cst_14 = arith.constant 0.000000e+00 : f32
      %33 = vector.broadcast %cst_14 : f32 to vector<8x8xf32>
      %34 = arith.cmpf ogt, %32, %33 : vector<8x8xf32>
      %cst_15 = arith.constant 0.00999999977 : f32
      %35 = vector.broadcast %cst_15 : f32 to vector<8x8xf32>
      %36 = arith.mulf %35, %32 : vector<8x8xf32>
      %37 = arith.select %34, %32, %36 : vector<8x8xi1>, vector<8x8xf32>
      %c0_16 = arith.constant 0 : index
      %c0_17 = arith.constant 0 : index
      %38 = vector.load %arg11[%c0_16, %c0_17] : memref<8x10xf32, #tpu.memory_space<vmem>>, vector<8x10xf32>
      %cst_18 = arith.constant dense<0.000000e+00> : vector<8x10xf32>
      %39 = tpu.matmul %37, %38, %cst_18 {dimension_numbers = #tpu.dot_dimension_numbers<[1], [0], [0], [1], [0, 0, 1, 1], [], []>} : vector<8x8xf32>, vector<8x10xf32>, vector<8x10xf32> -> vector<8x10xf32>
      %c0_19 = arith.constant 0 : index
      %c0_20 = arith.constant 0 : index
      %40 = vector.load %arg12[%c0_19, %c0_20] : memref<1x10xf32, #tpu.memory_space<vmem>>, vector<1x10xf32>
      %41 = vector.broadcast %40 : vector<1x10xf32> to vector<8x10xf32>
      %42 = arith.addf %39, %41 : vector<8x10xf32>
      %c0_21 = arith.constant 0 : index
      %c0_22 = arith.constant 0 : index
      %43 = vector.load %arg13[%c0_21, %c0_22] : memref<8x10xf32, #tpu.memory_space<vmem>>, vector<8x10xf32>
      tpu.vector_store %arg13[%c0_21, %c0_22], %42 {strides = array<i32>} : memref<8x10xf32, #tpu.memory_space<vmem>>, vector<8x10xf32>,
    } else {
    }
    return
  }
  func.func @transform_0(%arg0: i32, %arg1: i32) -> (i32, i32) {
    %c1_i32 = arith.constant 1 : i32
    %0 = arith.subi %c1_i32, %arg0 : i32
    %1 = arith.muli %arg1, %0 : i32
    %c0_i32 = arith.constant 0 : i32
    %2 = arith.muli %c0_i32, %arg0 : i32
    %3 = arith.addi %1, %2 : i32
    %c0_i32_0 = arith.constant 0 : i32
    %c0_i32_1 = arith.constant 0 : i32
    return %3, %c0_i32_0 : i32, i32
  }
  func.func @transform_1(%arg0: i32, %arg1: i32) -> (i32, i32) {
    %c0_i32 = arith.constant 0 : i32
    %c0_i32_0 = arith.constant 0 : i32
    %c0_i32_1 = arith.constant 0 : i32
    return %c0_i32, %c0_i32_0 : i32, i32
  }
  func.func @transform_2(%arg0: i32, %arg1: i32) -> (i32, i32) {
    %c0_i32 = arith.constant 0 : i32
    %c0_i32_0 = arith.constant 0 : i32
    %c0_i32_1 = arith.constant 0 : i32
    return %c0_i32, %c0_i32_0 : i32, i32
  }
  func.func @transform_3(%arg0: i32, %arg1: i32) -> (i32, i32) {
    %c0_i32 = arith.constant 0 : i32
    %c0_i32_0 = arith.constant 0 : i32
    %c0_i32_1 = arith.constant 0 : i32
    return %c0_i32, %c0_i32_0 : i32, i32
  }
  func.func @transform_4(%arg0: i32, %arg1: i32) -> (i32, i32) {
    %c0_i32 = arith.constant 0 : i32
    %c0_i32_0 = arith.constant 0 : i32
    %c0_i32_1 = arith.constant 0 : i32
    return %c0_i32, %c0_i32_0 : i32, i32
  }
  func.func @transform_5(%arg0: i32, %arg1: i32) -> (i32, i32) {
    %c0_i32 = arith.constant 0 : i32
    %c0_i32_0 = arith.constant 0 : i32
    %c0_i32_1 = arith.constant 0 : i32
    return %c0_i32, %c0_i32_0 : i32, i32
  }
  func.func @transform_6(%arg0: i32, %arg1: i32) -> (i32, i32) {
    %c0_i32 = arith.constant 0 : i32
    %c0_i32_0 = arith.constant 0 : i32
    %c0_i32_1 = arith.constant 0 : i32
    return %c0_i32, %c0_i32_0 : i32, i32
  }
  func.func @transform_7(%arg0: i32, %arg1: i32) -> (i32, i32) {
    %c0_i32 = arith.constant 0 : i32
    %c0_i32_0 = arith.constant 0 : i32
    %c0_i32_1 = arith.constant 0 : i32
    return %c0_i32, %c0_i32_0 : i32, i32
  }
  func.func @transform_8(%arg0: i32, %arg1: i32) -> (i32, i32) {
    %c0_i32 = arith.constant 0 : i32
    %c0_i32_0 = arith.constant 0 : i32
    %c0_i32_1 = arith.constant 0 : i32
    return %c0_i32, %c0_i32_0 : i32, i32
  }
  func.func @transform_9(%arg0: i32, %arg1: i32) -> (i32, i32) {
    %c0_i32 = arith.constant 0 : i32
    %c0_i32_0 = arith.constant 0 : i32
    %c0_i32_1 = arith.constant 0 : i32
    return %c0_i32, %c0_i32_0 : i32, i32
  }
  func.func @transform_10(%arg0: i32, %arg1: i32) -> (i32, i32) {
    %c0_i32 = arith.constant 0 : i32
    %c0_i32_0 = arith.constant 0 : i32
    %c0_i32_1 = arith.constant 0 : i32
    return %c0_i32, %c0_i32_0 : i32, i32
  }
  func.func @transform_11(%arg0: i32, %arg1: i32) -> (i32, i32) {
    %0 = arith.muli %arg1, %arg0 : i32
    %c0_i32 = arith.constant 0 : i32
    %c0_i32_0 = arith.constant 0 : i32
    return %0, %c0_i32 : i32, i32
  }
}

</mosaic_0001>

<bundles_post_ra>
// kernel: tpu_custom_call.1
= control target key start
LH: loop header
LB: loop body
LE: loop exit
PB: predicated region body
PF: predicated region fallthrough
CT: control target
= control target key end

     0   :  { %s1969_s0 = inlined_call_operand.vmem [shape: f32[8,784], index: 0, kind: input, shape index: {}]   ;;  %s1970_s1 = inlined_call_operand.vmem [shape: f32[784,1], index: 1, kind: input, shape index: {}]   ;;  %s1971_s2 = inlined_call_operand.<no memory space> [shape: f32[1,1], index: 2, kind: input, shape index: {}]   ;;  %s1972_s5 = inlined_call_operand.vmem [shape: f32[1,8], index: 5, kind: input, shape index: {}]   ;;  %s1973_s6 = inlined_call_operand.vmem [shape: f32[1,8], index: 6, kind: input, shape index: {}]   ;;  %s1974_s7 = inlined_call_operand.vmem [shape: f32[1,8], index: 7, kind: input, shape index: {}]   ;;  %s1975_s8 = inlined_call_operand.vmem [shape: f32[1,8], index: 8, kind: input, shape index: {}]   ;;  %s1976_s9 = inlined_call_operand.vmem [shape: f32[8,10], index: 9, kind: input, shape index: {}]   ;;  %s1977_s10 = inlined_call_operand.vmem [shape: f32[1,10], index: 10, kind: input, shape index: {}]   ;;  %s1978_s11 = inlined_call_operand.hbm [shape: f32[8,10], index: 11, kind: output, shape index: {}]   ;;  %s1979_s3 = inlined_call_operand.<no memory space> [shape: f32[1,1], index: 3, kind: input, shape index: {}]   ;;  %s1980_s4 = inlined_call_operand.<no memory space> [shape: f32[1,1], index: 4, kind: input, shape index: {}]  }
   0x1   :  { %v16_v0 = vstv %s1971_s2  ;;  %v18_v1 = vstv %s1979_s3  ;;  %v20_v2 = vstv %s1980_s4 }
   0x2   :  { %17 = vst [vmem:[#allocation7] sm:$0x1] %v16_v0  ;;  %19 = vst [vmem:[#allocation8] sm:$0x1] %v18_v1 }
   0x3   :  { %21 = vst [vmem:[#allocation9] sm:$0x1] %v20_v2 }
   0x4   :  { %22 = vsyncpa [#allocation11], 0 }
   0x5   :  { %24 = vsyncpa [#allocation11 + $0x1], 0  ;;  %s1571_s23 = smov 0   ;;  %s1573_s24 = smov 0  }
   0x6   :  { %s1575_s25 = smov 0  }
   0x7 LB: > { %s1148_s2 = sadd.s32 4294967295, %s1492_s25   ;;  %s1149_s3 = sadd.s32 4294967294, %s1492_s25   ;;  %s1492_s25 = sphi %s1575_s25, %s30_s25   ;;  %s1488_s24 = sphi %s1573_s24, %s1983_s24   ;;  %s1484_s23 = sphi %s1571_s23, %s1982_s23  }
   0x8   : > { %s42_s4 = sadd.s32 1, %s1488_s24  ;;  %p1153_p0 = scmp.ge.s32.totalorder %s1492_s25, 1 }
   0x9   : > { %p44_p1 = scmp.ge.s32.totalorder %s42_s4, 2  ;;  %p368_p2 = scmp.lt.s32.totalorder %s1492_s25, 3 }
   0xb   : > { %s1985_s4 = smov (%p44_p1, %s42_s4), 0  ;;  %p369_p3 = pnand %p1153_p0, %p368_p2 }
   0xc   : > { %p1154_p4 = scmp.ne.s32.totalorder (!%p369_p3), %s1484_s23, 0 }
   0xd   : > { %372 = sbr.rel (%p369_p3) target bundleno = 940 (0x3ac), region = 64 }
  0x14   : > { %423 = sbr.rel (%p1154_p4) target bundleno = 307 (0x133), region = 68  ;;  %v447_v3 = vld [vmem:[%s1970_s1 + $0x80] sm:$0xff] (!%p1154_p4)  ;;  %v448_v4 = vld [vmem:[%s1970_s1 + $0x88] sm:$0xff] (!%p1154_p4)  ;;  %v449_v14 = vld [vmem:[%s1970_s1 + $0x90] sm:$0xff] (!%p1154_p4)  ;;  %vm1495_vm0 = vmmov (!%p1154_p4), 0   ;;  %vm536_vm1 = vcmask (!%p1154_p4), 130048  }
  0x15   : > { %v431_v5 = vld [vmem:[%s1970_s1] sm:$0xff] (!%p1154_p4)  ;;  %v1292_v6 = vpack.c.bf16 (!%p1154_p4), %v448_v4, %v447_v3  ;;  %v432_v7 = vld [vmem:[%s1970_s1 + $0x8] sm:$0xff] (!%p1154_p4)  ;;  %v450_v16 = vld [vmem:[%s1970_s1 + $0x98] sm:$0xff] (!%p1154_p4)  ;;  %vm822_vm2 = vcmask (!%p1154_p4), 7168  }
  0x16   : > { %v479_v8 = vld [vmem:[%s1970_s1 + $0x180] sm:$0xff] (!%p1154_p4)  ;;  %v480_v9 = vld [vmem:[%s1970_s1 + $0x188] sm:$0xff] (!%p1154_p4)  ;;  %v1294_v10 = vpack.c.bf16 (!%p1154_p4), %v432_v7, %v431_v5  ;;  %v433_v17 = vld [vmem:[%s1970_s1 + $0x10] sm:$0xff] (!%p1154_p4)  ;;  %v1296_v19 = vpack.c.bf16 (!%p1154_p4), %v450_v16, %v449_v14 }
  0x17   : > { %v1324_v11 = vpack.c.bf16 (!%p1154_p4), %v480_v9, %v479_v8  ;;  %v463_v12 = vld [vmem:[%s1970_s1 + $0x100] sm:$0xff] (!%p1154_p4)  ;;  %v464_v13 = vld [vmem:[%s1970_s1 + $0x108] sm:$0xff] (!%p1154_p4)  ;;  %1293 = vmatprep.subr.bf16.mxu0 (!%p1154_p4), %v1292_v6  ;;  %v434_v18 = vld [vmem:[%s1970_s1 + $0x18] sm:$0xff] (!%p1154_p4) }
  0x18   : > { %v1326_v15 = vpack.c.bf16 (!%p1154_p4), %v464_v13, %v463_v12  ;;  %1295 = vmatpush3.bf16.msra.mxu0 (!%p1154_p4), %v1294_v10  ;;  %v1298_v20 = vpack.c.bf16 (!%p1154_p4), %v434_v18, %v433_v17  ;;  %v481_v21 = vld [vmem:[%s1970_s1 + $0x190] sm:$0xff] (!%p1154_p4)  ;;  %v482_v22 = vld [vmem:[%s1970_s1 + $0x198] sm:$0xff] (!%p1154_p4)  ;;  %v451_v26 = vld [vmem:[%s1970_s1 + $0xa0] sm:$0xff] (!%p1154_p4) }
  0x19   : > { %1325 = vmatprep.subr.bf16.mxu1 (!%p1154_p4), %v1324_v11  ;;  %v465_v23 = vld [vmem:[%s1970_s1 + $0x110] sm:$0xff] (!%p1154_p4)  ;;  %v1328_v24 = vpack.c.bf16 (!%p1154_p4), %v482_v22, %v481_v21  ;;  %v466_v25 = vld [vmem:[%s1970_s1 + $0x118] sm:$0xff] (!%p1154_p4)  ;;  %v452_v27 = vld [vmem:[%s1970_s1 + $0xa8] sm:$0xff] (!%p1154_p4)  ;;  %1297 = vmatprep.subr.bf16.mxu0 (!%p1154_p4), %v1296_v19 }
  0x1a   : > { %1327 = vmatpush3.bf16.msra.mxu1 (!%p1154_p4), %v1326_v15  ;;  %v1330_v28 = vpack.c.bf16 (!%p1154_p4), %v466_v25, %v465_v23  ;;  %v1300_v29 = vpack.c.bf16 (!%p1154_p4), %v452_v27, %v451_v26  ;;  %v435_v30 = vld [vmem:[%s1970_s1 + $0x20] sm:$0xff] (!%p1154_p4)  ;;  %v436_v31 = vld [vmem:[%s1970_s1 + $0x28] sm:$0xff] (!%p1154_p4)  ;;  %v453_v38 = vld [vmem:[%s1970_s1 + $0xb0] sm:$0xff] (!%p1154_p4) }
  0x1b   : > { %v483_v32 = vld [vmem:[%s1970_s1 + $0x1a0] sm:$0xff]  ;;  %1329 = vmatprep.subr.bf16.mxu1 %v1328_v24  ;;  %v484_v33 = vld [vmem:[%s1970_s1 + $0x1a8] sm:$0xff]  ;;  %v1302_v36 = vpack.c.bf16 %v436_v31, %v435_v30  ;;  %v454_v39 = vld [vmem:[%s1970_s1 + $0xb8] sm:$0xff] }
  0x1c   : > { %v467_v34 = vld [vmem:[%s1970_s1 + $0x120] sm:$0xff]  ;;  %v468_v35 = vld [vmem:[%s1970_s1 + $0x128] sm:$0xff]  ;;  %1299 = vmatpush3.bf16.msra.mxu0 %v1298_v20  ;;  %v1332_v37 = vpack.c.bf16 %v484_v33, %v483_v32  ;;  %v437_v40 = vld [vmem:[%s1970_s1 + $0x30] sm:$0xff]  ;;  %v1304_v42 = vpack.c.bf16 %v454_v39, %v453_v38 }
  0x1d   : > { %1301 = vmatprep.subr.bf16.mxu0 %v1300_v29  ;;  %v1334_v41 = vpack.c.bf16 %v468_v35, %v467_v34  ;;  %v438_v43 = vld [vmem:[%s1970_s1 + $0x38] sm:$0xff]  ;;  %v485_v44 = vld [vmem:[%s1970_s1 + $0x1b0] sm:$0xff]  ;;  %v455_v49 = vld [vmem:[%s1970_s1 + $0xc0] sm:$0xff] }
  0x1e   : > { %1331 = vmatpush3.bf16.msra.mxu1 %v1330_v28  ;;  %v486_v45 = vld [vmem:[%s1970_s1 + $0x1b8] sm:$0xff]  ;;  %v469_v47 = vld [vmem:[%s1970_s1 + $0x130] sm:$0xff]  ;;  %v456_v50 = vld [vmem:[%s1970_s1 + $0xc8] sm:$0xff]  ;;  %v1306_v51 = vpack.c.bf16 %v438_v43, %v437_v40 }
  0x1f   : > { %1333 = vmatprep.subr.bf16.mxu1 %v1332_v37  ;;  %v1336_v46 = vpack.c.bf16 %v486_v45, %v485_v44  ;;  %v470_v48 = vld [vmem:[%s1970_s1 + $0x138] sm:$0xff]  ;;  %v487_v52 = vld [vmem:[%s1970_s1 + $0x1c0] sm:$0xff]  ;;  %v488_v53 = vld [vmem:[%s1970_s1 + $0x1c8] sm:$0xff]  ;;  %v1308_v55 = vpack.c.bf16 %v456_v50, %v455_v49 }
  0x20   : > { %1303 = vmatpush3.bf16.msra.mxu0 %v1302_v36  ;;  %v1338_v54 = vpack.c.bf16 %v470_v48, %v469_v47  ;;  %v439_v56 = vld [vmem:[%s1970_s1 + $0x40] sm:$0xff]  ;;  %v440_v57 = vld [vmem:[%s1970_s1 + $0x48] sm:$0xff]  ;;  %v1340_v59 = vpack.c.bf16 %v488_v53, %v487_v52  ;;  %v457_v61 = vld [vmem:[%s1970_s1 + $0xd0] sm:$0xff]  ;;  %v1494_v53 = vmov 0.0|0.0  }
  0x21   : > { %1305 = vmatprep.subr.bf16.mxu0 %v1304_v42  ;;  %v471_v58 = vld [vmem:[%s1970_s1 + $0x140] sm:$0xff]  ;;  %v472_v60 = vld [vmem:[%s1970_s1 + $0x148] sm:$0xff]  ;;  %v458_v62 = vld [vmem:[%s1970_s1 + $0xd8] sm:$0xff]  ;;  %v1310_v1 = vpack.c.bf16 %v440_v57, %v439_v56 }
  0x22   : > { %1335 = vmatpush3.bf16.msra.mxu1 %v1334_v41  ;;  %v489_v63 = vld [vmem:[%s1970_s1 + $0x1d0] sm:$0xff]  ;;  %v490_v0 = vld [vmem:[%s1970_s1 + $0x1d8] sm:$0xff]  ;;  %v1342_v2 = vpack.c.bf16 %v472_v60, %v471_v58  ;;  %v1312_v3 = vpack.c.bf16 %v458_v62, %v457_v61  ;;  %v459_v9 = vld [vmem:[%s1970_s1 + $0xe0] sm:$0xff] }
  0x23   : > { %1337 = vmatprep.subr.bf16.mxu1 %v1336_v46  ;;  %v441_v4 = vld [vmem:[%s1970_s1 + $0x50] sm:$0xff]  ;;  %v442_v5 = vld [vmem:[%s1970_s1 + $0x58] sm:$0xff]  ;;  %v1344_v7 = vpack.c.bf16 %v490_v0, %v489_v63  ;;  %v460_v10 = vld [vmem:[%s1970_s1 + $0xe8] sm:$0xff]  ;;  %v1496_v63 = vmov 0.0  }
  0x24   : > { %1307 = vmatpush3.bf16.msra.mxu0 %v1306_v51  ;;  %v473_v6 = vld [vmem:[%s1970_s1 + $0x150] sm:$0xff]  ;;  %v474_v8 = vld [vmem:[%s1970_s1 + $0x158] sm:$0xff]  ;;  %v491_v11 = vld [vmem:[%s1970_s1 + $0x1e0] sm:$0xff]  ;;  %v1314_v13 = vpack.c.bf16 %v442_v5, %v441_v4  ;;  %v1316_v17 = vpack.c.bf16 %v460_v10, %v459_v9 }
  0x25   : > { %1309 = vmatprep.subr.bf16.mxu0 %v1308_v55  ;;  %v492_v12 = vld [vmem:[%s1970_s1 + $0x1e8] sm:$0xff]  ;;  %v443_v14 = vld [vmem:[%s1970_s1 + $0x60] sm:$0xff]  ;;  %v1346_v16 = vpack.c.bf16 %v474_v8, %v473_v6  ;;  %v461_v22 = vld [vmem:[%s1970_s1 + $0xf0] sm:$0xff] }
  0x26   : > { %1339 = vmatpush3.bf16.msra.mxu1 %v1338_v54  ;;  %v425_v15 = vld [vmem:[%s1969_s0 + $0x8] sm:$0xff]  ;;  %v475_v19 = vld [vmem:[%s1970_s1 + $0x160] sm:$0xff]  ;;  %v1348_v21 = vpack.c.bf16 %v492_v12, %v491_v11  ;;  %v462_v23 = vld [vmem:[%s1970_s1 + $0xf8] sm:$0xff] }
  0x27   : > { %1341 = vmatprep.subr.bf16.mxu1 %v1340_v59  ;;  %v444_v18 = vld [vmem:[%s1970_s1 + $0x68] sm:$0xff]  ;;  %604 = vmatprep.mubr.f32.mxu0 %v425_v15  ;;  %v427_v24 = vld [vmem:[%s1969_s0 + $0x18] sm:$0xff]  ;;  %v493_v25 = vld [vmem:[%s1970_s1 + $0x1f0] sm:$0xff]  ;;  %v1320_v29 = vpack.c.bf16 %v462_v23, %v461_v22 }
  0x28   : > { %1311 = vmatpush3.bf16.msra.mxu0 %v1310_v1  ;;  %v476_v20 = vld [vmem:[%s1970_s1 + $0x168] sm:$0xff]  ;;  %v494_v26 = vld [vmem:[%s1970_s1 + $0x1f8] sm:$0xff]  ;;  %674 = vmatprep.mubr.f32.mxu1 %v427_v24  ;;  %v1318_v27 = vpack.c.bf16 %v444_v18, %v443_v14  ;;  %v445_v30 = vld [vmem:[%s1970_s1 + $0x70] sm:$0xff] }
  0x29   : > { %1313 = vmatprep.subr.bf16.mxu0 %v1312_v3  ;;  %v1350_v28 = vpack.c.bf16 %v476_v20, %v475_v19  ;;  %v446_v31 = vld [vmem:[%s1970_s1 + $0x78] sm:$0xff]  ;;  %v477_v32 = vld [vmem:[%s1970_s1 + $0x170] sm:$0xff]  ;;  %v1352_v33 = vpack.c.bf16 %v494_v26, %v493_v25  ;;  %v511_v35 = vld [vmem:[%s1970_s1 + $0x280] sm:$0xff] }
  0x2a   : > { %1343 = vmatpush3.bf16.msra.mxu1 %v1342_v2  ;;  %v478_v34 = vld [vmem:[%s1970_s1 + $0x178] sm:$0xff]  ;;  %v512_v36 = vld [vmem:[%s1970_s1 + $0x288] sm:$0xff]  ;;  %v1322_v37 = vpack.c.bf16 %v446_v31, %v445_v30  ;;  %v495_v40 = vld [vmem:[%s1970_s1 + $0x200] sm:$0xff] }
  0x2b   : > { %1345 = vmatprep.subr.bf16.mxu1 %v1344_v7  ;;  %v1354_v38 = vpack.c.bf16 %v478_v34, %v477_v32  ;;  %v1356_v39 = vpack.c.bf16 %v512_v36, %v511_v35  ;;  %v496_v41 = vld [vmem:[%s1970_s1 + $0x208] sm:$0xff]  ;;  %v513_v42 = vld [vmem:[%s1970_s1 + $0x290] sm:$0xff]  ;;  %v514_v43 = vld [vmem:[%s1970_s1 + $0x298] sm:$0xff] }
  0x2c   : > { %1315 = vmatpush3.bf16.msra.mxu0 %v1314_v13  ;;  %v424_v44 = vld [vmem:[%s1969_s0] sm:$0xff]  ;;  %v1358_v45 = vpack.c.bf16 %v496_v41, %v495_v40  ;;  %v426_v46 = vld [vmem:[%s1969_s0 + $0x10] sm:$0xff]  ;;  %v1360_v48 = vpack.c.bf16 %v514_v43, %v513_v42  ;;  %v498_v49 = vld [vmem:[%s1970_s1 + $0x218] sm:$0xff] }
  0x2d   : > { %1317 = vmatprep.subr.bf16.mxu0 %v1316_v17  ;;  %v497_v47 = vld [vmem:[%s1970_s1 + $0x210] sm:$0xff]  ;;  %v515_v50 = vld [vmem:[%s1970_s1 + $0x2a0] sm:$0xff]  ;;  %v516_v51 = vld [vmem:[%s1970_s1 + $0x2a8] sm:$0xff] }
  0x2e   : > { %1347 = vmatpush3.bf16.msra.mxu1 %v1346_v16  ;;  %v429_v52 = vld [vmem:[%s1969_s0 + $0x28] sm:$0xff]  ;;  %v527_v54 = vld [vmem:[%s1970_s1 + $0x300] sm:$0xff]  ;;  %v1362_v57 = vpack.c.bf16 %v498_v49, %v497_v47  ;;  %v1364_v58 = vpack.c.bf16 %v516_v51, %v515_v50  ;;  %v517_v61 = vld [vmem:[%s1970_s1 + $0x2b0] sm:$0xff] }
  0x2f   : > { %1349 = vmatprep.subr.bf16.mxu1 %v1348_v21  ;;  %v528_v55 = vld [vmem:[%s1970_s1 + $0x308] sm:$0xff]  ;;  %v499_v59 = vld [vmem:[%s1970_s1 + $0x220] sm:$0xff]  ;;  %v518_v62 = vld [vmem:[%s1970_s1 + $0x2b8] sm:$0xff] }
  0x30   : > { %1319 = vmatpush3.bf16.msra.mxu0 %v1318_v27  ;;  %v1389_v56 = vpack.c.bf16 %v528_v55, %v527_v54  ;;  %v500_v60 = vld [vmem:[%s1970_s1 + $0x228] sm:$0xff]  ;;  %v430_v0 = vld [vmem:[%s1969_s0 + $0x30] sm:$0xff]  ;;  %v1368_v2 = vpack.c.bf16 %v518_v62, %v517_v61  ;;  %v502_v4 = vld [vmem:[%s1970_s1 + $0x238] sm:$0xff] }
  0x31   : > { %1321 = vmatprep.subr.bf16.mxu0 %v1320_v29  ;;  %v1366_v1 = vpack.c.bf16 %v500_v60, %v499_v59  ;;  %v501_v3 = vld [vmem:[%s1970_s1 + $0x230] sm:$0xff]  ;;  %v519_v5 = vld [vmem:[%s1970_s1 + $0x2c0] sm:$0xff]  ;;  %v520_v6 = vld [vmem:[%s1970_s1 + $0x2c8] sm:$0xff] }
  0x32   : > { %1351 = vmatpush3.bf16.msra.mxu1 %v1350_v28  ;;  %v1370_v7 = vpack.c.bf16 %v502_v4, %v501_v3  ;;  %v1372_v8 = vpack.c.bf16 %v520_v6, %v519_v5  ;;  %v503_v9 = vld [vmem:[%s1970_s1 + $0x240] sm:$0xff]  ;;  %v504_v10 = vld [vmem:[%s1970_s1 + $0x248] sm:$0xff]  ;;  %v521_v11 = vld [vmem:[%s1970_s1 + $0x2d0] sm:$0xff] }
  0x33   : > { %1353 = vmatprep.subr.bf16.mxu1 %v1352_v33  ;;  %v522_v12 = vld [vmem:[%s1970_s1 + $0x2d8] sm:$0xff]  ;;  %v1374_v13 = vpack.c.bf16 %v504_v10, %v503_v9  ;;  %v505_v15 = vld [vmem:[%s1970_s1 + $0x250] sm:$0xff]  ;;  %v523_v17 = vld [vmem:[%s1970_s1 + $0x2e0] sm:$0xff] }
  0x34   : > { %1323 = vmatpush3.bf16.msra.mxu0 %v1322_v37  ;;  %v1376_v14 = vpack.c.bf16 %v522_v12, %v521_v11  ;;  %v506_v16 = vld [vmem:[%s1970_s1 + $0x258] sm:$0xff]  ;;  %v524_v18 = vld [vmem:[%s1970_s1 + $0x2e8] sm:$0xff]  ;;  %v507_v21 = vld [vmem:[%s1970_s1 + $0x260] sm:$0xff] }
  0x35   : > { %1357 = vmatprep.subr.bf16.mxu0 %v1356_v39  ;;  %v1378_v19 = vpack.c.bf16 %v506_v16, %v505_v15  ;;  %v1380_v20 = vpack.c.bf16 %v524_v18, %v523_v17  ;;  %v508_v22 = vld [vmem:[%s1970_s1 + $0x268] sm:$0xff]  ;;  %v525_v23 = vld [vmem:[%s1970_s1 + $0x2f0] sm:$0xff]  ;;  %v526_v24 = vld [vmem:[%s1970_s1 + $0x2f8] sm:$0xff] }
  0x36   : > { %1355 = vmatpush3.bf16.msra.mxu1 %v1354_v38  ;;  %v1382_v25 = vpack.c.bf16 %v508_v22, %v507_v21  ;;  %v1384_v26 = vpack.c.bf16 %v526_v24, %v525_v23  ;;  %v509_v27 = vld [vmem:[%s1970_s1 + $0x270] sm:$0xff]  ;;  %v510_v28 = vld [vmem:[%s1970_s1 + $0x278] sm:$0xff]  ;;  %v428_v30 = vld [vmem:[%s1969_s0 + $0x20] sm:$0xff] }
  0x37   : > { %1388 = vmatprep.subr.bf16.mxu1 %v1494_v53  ;;  %605 = vmatmul.mubr.f32.vlgmr.msra.gmra.mrb[0].mxu0 %v424_v44  ;;  %v1386_v29 = vpack.c.bf16 %v510_v28, %v509_v27  ;;  %v1155_v32 = vld [vmem:[#allocation7] ss:$0 sm:$0xff] }
  0x38   : > { %1359 = vmatpush3.bf16.msra.mxu0 %v1358_v45  ;;  %744 = vmatprep.mubr.f32.mxu0 %v429_v52 }
  0x39   : > { %675 = vmatmul.mubr.f32.vlgmr.msra.gmra.mrb[0].mxu1 %v426_v46  ;;  %1361 = vmatprep.subr.bf16.mxu0 %v1360_v48 }
  0x3a   : > { %1390 = vmatpush3.bf16.msra.mxu1 %v1389_v56  ;;  %1284 = vmatprep.mubr.msk.f32.mxu1 %vm1495_vm0, %v1496_v63 }
  0x3c   : > { %1363 = vmatpush3.bf16.msra.mxu0 %v1362_v57 }
  0x3d   : > { %1365 = vmatprep.subr.bf16.mxu0 %v1364_v58  ;;  %1285 = vmatmul.mubr.msk.f32.vlgmr.msra.gmra.mrb[2].mxu1 %vm536_vm1, %v430_v0 }
  0x40   : > { %1367 = vmatpush3.bf16.msra.mxu0 %v1366_v1 }
  0x41   : > { %1369 = vmatprep.subr.bf16.mxu0 %v1368_v2 }
  0x44   : > { %1371 = vmatpush3.bf16.msra.mxu0 %v1370_v7 }
  0x45   : > { %1373 = vmatprep.subr.bf16.mxu0 %v1372_v8 }
  0x48   : > { %1375 = vmatpush3.bf16.msra.mxu0 %v1374_v13 }
  0x49   : > { %1377 = vmatprep.subr.bf16.mxu0 %v1376_v14 }
  0x4c   : > { %1379 = vmatpush3.bf16.msra.mxu0 %v1378_v19 }
  0x4d   : > { %1381 = vmatprep.subr.bf16.mxu0 %v1380_v20 }
  0x50   : > { %1383 = vmatpush3.bf16.msra.mxu0 %v1382_v25 }
  0x51   : > { %1385 = vmatprep.subr.bf16.mxu0 %v1384_v26 }
  0x54   : > { %1387 = vmatpush3.bf16.msra.mxu0 %v1386_v29 }
  0x57   : > { %745 = vmatmul.mubr.f32.vlgmr.msra.gmra.mrb[2].mxu0 %v428_v30 }
 0x10a   : > { %v1202_v31 = vpop.f32.mrb[0].mxu0 }
 0x10b   : > { %v1203_v33 = vpop.f32.mrb[1].mxu0 }
 0x10c   : > { %v1237_v34 = vpop.f32.mrb[0].mxu1  ;;  %v1204_v35 = vadd.f32 %v1203_v33, %v1202_v31 }
 0x10d   : > { %v1238_v36 = vpop.f32.mrb[1].mxu1 }
 0x10e   : > { %v1239_v37 = vadd.f32 %v1238_v36, %v1237_v34  ;;  %v607_v38 = vadd.f32 %v1204_v35, %v1155_v32 }
 0x110   : > { %v677_v39 = vadd.f32 %v1239_v37, %v607_v38  ;;  %v816_v40 = vpop.f32.mrb[2].mxu1 }
 0x111   : > { %v1286_v41 = vpop.f32.mrb[3].mxu1 }
 0x12a   : > { %v1272_v42 = vpop.f32.mrb[2].mxu0 }
 0x12b   : > { %v1273_v43 = vpop.f32.mrb[3].mxu0 }
 0x12c   : > { %v1274_v44 = vadd.f32 %v1273_v43, %v1272_v42 }
 0x12e   : > { %v747_v45 = vadd.f32 %v1274_v44, %v677_v39 }
 0x130   : > { %v817_v46 = vadd.f32 %v816_v40, %v747_v45 }
 0x132   : > { %823 = vst.msk [vmem:[#allocation2] sm:$0xff] %vm822_vm2, %v817_v46 }
 0x133 PF: > { %p824_p5 = scmp.eq.s32.totalorder %s1484_s23, 1 }
 0x134   : > { %vm835_vm3 = vcmask (%p824_p5), 7168   ;;  %v1497_v48 = vmov (%p824_p5), 0   ;;  %v865_v4 = vlaneseq (%p824_p5)  ;;  %v857_v6 = vld [vmem:[#allocation8] sm:$0x1] (%p824_p5)  ;;  %vm862_vm4 = vcmask (%p824_p5), 0  }
 0x135   : > { %829 = sbr.rel (!%p824_p5) target bundleno = 558 (0x22e), region = 72  ;;  %1434 = vset.pattern.permute.xlu0 (%p824_p5), %v1497_v48  ;;  %v859_v10 = vld [vmem:[#allocation9] sm:$0x1] (%p824_p5)  ;;  %v900_v37 = vld [vmem:[%s1972_s5] sm:$0x1] (%p824_p5)  ;;  %vm921_vm6 = vcmask (%p824_p5), 57344  }
 0x136   : > { %v866_v5 = vshrl.u32 (%p824_p5), %v865_v4, 7  ;;  %v909_v38 = vmul.f32 (%p824_p5), %v900_v37, %v900_v37  ;;  %v901_v44 = vld [vmem:[%s1973_s6] sm:$0x1] (%p824_p5) }
 0x137   : > { %v918_v48 = vld [vmem:[%s1974_s7] sm:$0x1] (%p824_p5) }
 0x138   : > { %v867_v7 = vsub.s32 (%p824_p5), 0, %v866_v5 }
 0x139   : > { %v830_v47 = vld [vmem:[#allocation2] sm:$0xff] (%p824_p5) }
 0x13a   : > { %v836_v49 = vsel (%p824_p5), %vm835_vm3, %v830_v47, 0.0 }
 0x13b   : > { %v837_v50 = vrot.slane (%p824_p5), %v836_v49, 4 }
 0x13d   : > { %v838_v51 = vadd.f32 %v837_v50, %v836_v49 }
 0x13f   : > { %v839_v52 = vrot.slane %v838_v51, 2 }
 0x141   : > { %v840_v53 = vadd.f32 %v839_v52, %v838_v51  ;;  %v926_v51 = vld [vmem:[%s1975_s8] sm:$0x1] }
 0x143   : > { %v841_v54 = vrot.slane %v840_v53, 1 }
 0x145   : > { %v842_v55 = vadd.f32 %v841_v54, %v840_v53 }
 0x147   : > { %v843_v56 = vmul.f32 0.125, %v842_v55 }
 0x149   : > { %v844_v57 = vsub.f32 %v830_v47, %v843_v56 }
 0x14b   : > { %v846_v58 = vmul.f32 %v844_v57, %v844_v57 }
 0x14d   : > { %v847_v59 = vsel %vm835_vm3, %v846_v58, 0.0 }
 0x14e   : > { %v848_v60 = vrot.slane %v847_v59, 4 }
 0x150   : > { %v849_v61 = vadd.f32 %v848_v60, %v847_v59 }
 0x152   : > { %v850_v62 = vrot.slane %v849_v61, 2 }
 0x154   : > { %v851_v63 = vadd.f32 %v850_v62, %v849_v61 }
 0x156   : > { %v852_v0 = vrot.slane %v851_v63, 1 }
 0x158   : > { %v853_v1 = vadd.f32 %v852_v0, %v851_v63 }
 0x15a   : > { %v854_v2 = vmul.f32 0.125, %v853_v1 }
 0x15c   : > { %v855_v3 = vadd.f32 1e-05, %v854_v2 }
 0x15e   : > { %1435 = vrsqrt.f32 %v855_v3 }
 0x168   : > { %v1436_v8 = vpop.eup %1435 }
 0x169   : > { %v858_v9 = vmul.f32 %v1436_v8, %v857_v6 }
 0x16b   : > { %v860_v11 = vmul.f32 %v858_v9, %v843_v56  ;;  %863 = vst.msk [vmem:[#allocation3] sm:$0x1] %vm862_vm4, %v858_v9  ;;  %v868_v12 = vrot.slane %v858_v9, %v867_v7 }
 0x16d   : > { %v861_v13 = vsub.f32 %v859_v10, %v860_v11  ;;  %v869_v14 = vmul.f32 %v868_v12, %v830_v47 }
 0x16f   : > { %v874_v15 = vrot.slane %v861_v13, %v867_v7  ;;  %864 = vst.msk [vmem:[#allocation4] sm:$0x1] %vm862_vm4, %v861_v13 }
 0x171   : > { %v876_v16 = vadd.f32 %v874_v15, %v869_v14 }
 0x173   : > { %vm877_vm5 = vcmp.gt.f32.partialorder %v876_v16, 0.0  ;;  %v878_v17 = vmul.f32 0.01, %v876_v16 }
 0x175   : > { %v879_v18 = vsel %vm877_vm5, %v876_v16, %v878_v17 }
 0x176   : > { %v881_v19 = vsel %vm835_vm3, %v879_v18, 0.0 }
 0x177   : > { %v882_v20 = vrot.slane %v881_v19, 4 }
 0x179   : > { %v883_v21 = vadd.f32 %v882_v20, %v881_v19 }
 0x17b   : > { %v884_v22 = vrot.slane %v883_v21, 2 }
 0x17d   : > { %v885_v23 = vadd.f32 %v884_v22, %v883_v21 }
 0x17f   : > { %v886_v24 = vrot.slane %v885_v23, 1 }
 0x181   : > { %v887_v25 = vadd.f32 %v886_v24, %v885_v23 }
 0x183   : > { %v888_v26 = vmul.f32 0.125, %v887_v25 }
 0x185   : > { %v889_v27 = vsub.f32 %v879_v18, %v888_v26 }
 0x187   : > { %v891_v28 = vmul.f32 %v889_v27, %v889_v27 }
 0x189   : > { %v892_v29 = vsel %vm835_vm3, %v891_v28, 0.0 }
 0x18a   : > { %v893_v30 = vrot.slane %v892_v29, 4 }
 0x18c   : > { %v894_v31 = vadd.f32 %v893_v30, %v892_v29 }
 0x18e   : > { %v895_v32 = vrot.slane %v894_v31, 2 }
 0x190   : > { %v896_v33 = vadd.f32 %v895_v32, %v894_v31 }
 0x192   : > { %v897_v34 = vrot.slane %v896_v33, 1 }
 0x194   : > { %v898_v35 = vadd.f32 %v897_v34, %v896_v33 }
 0x196   : > { %v899_v36 = vmul.f32 0.125, %v898_v35 }
 0x198   : > { %912 = vperm.xlu0 %1434, %v899_v36  }
 0x19c   : > { %904 = vperm.xlu0 %1434, %v888_v26  }
 0x217   : > { %v913_v39 = vpop.permute.xlu0 %912 }
 0x218   : > { %v915_v40 = vmul.f32 %v913_v39, %v909_v38 }
 0x21a   : > { %v916_v41 = vadd.f32 1e-05, %v915_v40 }
 0x21b   : > { %v905_v42 = vpop.permute.xlu0 %904 }
 0x21c   : > { %1437 = vrsqrt.f32 %v916_v41  ;;  %v907_v43 = vmul.f32 %v905_v42, %v900_v37 }
 0x21e   : > { %v908_v45 = vadd.f32 %v907_v43, %v901_v44 }
 0x220   : > { %v923_v46 = vsub.f32 %v901_v44, %v908_v45 }
 0x226   : > { %v1438_v47 = vpop.eup %1437 }
 0x227   : > { %v919_v49 = vmul.f32 %v1438_v47, %v900_v37  ;;  %v924_v50 = vmul.f32 %v1438_v47, %v923_v46 }
 0x229   : > { %v920_v52 = vmul.f32 %v919_v49, %v918_v48  ;;  %v925_v53 = vmul.f32 %v924_v50, %v918_v48 }
 0x22b   : > { %922 = vst.msk [vmem:[#allocation5] sm:$0x1] %vm921_vm6, %v920_v52  ;;  %v927_v54 = vadd.f32 %v926_v51, %v925_v53 }
 0x22d   : > { %928 = vst.msk [vmem:[#allocation6] sm:$0x1] %vm921_vm6, %v927_v54 }
 0x22e PF: > { %p1158_p6 = scmp.ne.s32.totalorder %s1484_s23, 1 }
 0x22f   : > { %v934_v55 = vld [vmem:[#allocation2] sm:$0xff] (!%p1158_p6)  ;;  %v1159_v56 = vld [vmem:[#allocation3] ss:$0 sm:$0xff] (!%p1158_p6)  ;;  %v1160_v57 = vld [vmem:[#allocation4] ss:$0 sm:$0xff] (!%p1158_p6)  ;;  %v1498_v58 = vmov (!%p1158_p6), 0  }
 0x230   : > { %931 = sbr.rel (%p1158_p6) target bundleno = 917 (0x395), region = 76  ;;  %1439 = vset.pattern.permute.xlu0 (!%p1158_p6), %v1498_v58  ;;  %v942_v59 = vmul.f32 (!%p1158_p6), %v1159_v56, %v934_v55  ;;  %v978_v63 = vld [vmem:[%s1976_s9] sm:$0xff] (!%p1158_p6)  ;;  %v1499_v0 = vmov (!%p1158_p6), 0.0   ;;  %vm1500_vm8 = vmmov (!%p1158_p6), 0   ;;  %vm986_vm10 = vcmask (!%p1158_p6), 64512  }
 0x231   : > { %1287 = vmatprep.subr.mxu0 (!%p1158_p6), %v1499_v0  ;;  %1289 = vmatprep.mubr.msk.f32.mxu0 (!%p1158_p6), %vm1500_vm8, %v1499_v0  ;;  %v1163_v8 = vld [vmem:[%s1977_s10] ss:$0 sm:$0xff] (!%p1158_p6)  ;;  %vm1060_vm11 = vcmask (!%p1158_p6), 80896  }
 0x232   : > { %v950_v60 = vadd.f32 (!%p1158_p6), %v1160_v57, %v942_v59  ;;  %1288 = vmatpush3.msra.mxu0 (!%p1158_p6), %v978_v63  ;;  %v1161_v1 = vld [vmem:[#allocation5] ss:$0 sm:$0xff] (!%p1158_p6) }
 0x234   : > { %vm951_vm7 = vcmp.gt.f32.partialorder (!%p1158_p6), %v950_v60, 0.0  ;;  %v952_v61 = vmul.f32 (!%p1158_p6), 0.01, %v950_v60  ;;  %v1162_v2 = vld [vmem:[#allocation6] ss:$0 sm:$0xff] (!%p1158_p6) }
 0x236   : > { %v953_v62 = vsel (!%p1158_p6), %vm951_vm7, %v950_v60, %v952_v61 }
 0x237   : > { %957 = vperm.xlu0 %1439, %v953_v62  }
 0x2b6   : > { %v958_v3 = vpop.permute.xlu0 %957 }
 0x2b7   : > { %v966_v4 = vmul.f32 %v1161_v1, %v958_v3 }
 0x2b9   : > { %v974_v5 = vadd.f32 %v1162_v2, %v966_v4 }
 0x2bb   : > { %v976_v6 = vmul.f32 0.01, %v974_v5  ;;  %vm975_vm9 = vcmp.gt.f32.partialorder %v974_v5, 0.0 }
 0x2bd   : > { %v977_v7 = vsel %vm975_vm9, %v974_v5, %v976_v6 }
 0x2be   : > { %1290 = vmatmul.mubr.msk.f32.vlgmr.msra.gmra.mrb[0].mxu0 %vm986_vm10, %v977_v7 }
 0x391   : > { %v1056_v9 = vpop.f32.mrb[0].mxu0 }
 0x392   : > { %v1057_v10 = vadd.f32 %v1163_v8, %v1056_v9  ;;  %v1291_v11 = vpop.f32.mrb[1].mxu0 }
 0x394   : > { %1061 = vst.msk [vmem:[#allocation10] sm:$0xff] %vm1060_vm11, %v1057_v10 }
 0x395 PF: > { %p1935_p7 = scmp.eq.s32.totalorder %s1148_s2, 1  ;;  %s1501_s21 = smov [#allocation10]  }
 0x396   : > { %s1077_s22 = sshll.u32 %s1501_s21, 4  ;;  %s1078_s22 = int_to_ptr.vmem [resolvable:$true] %s1077_s22 }
 0x397   : > { %s1440_s26 = scalar_lea.vmem %s1078_s22, 128  ;;  %s1446_s27 = scalar_lea.vmem %s1078_s22, 256 }
 0x398   : > { %p1441_p8 = scmp.ne.s32.totalorder %s1078_s22, %s1440_s26  ;;  %p1447_p11 = scmp.lt.s32.totalorder %s1078_s22, %s1078_s22 }
 0x399   : > { %p1448_p12 = scmp.lt.s32.totalorder %s1446_s27, %s1440_s26 }
 0x39a   : > { %p1442_p9 = pnand %p1441_p8, %p1935_p7 }
 0x39b   : > { %p1449_p13 = por %p1448_p12, %p1447_p11 }
 0x39c   : > { %p1443_p10 = pneg %p1442_p9 }
 0x39e   : > { %p1450_p0 = pnand %p1449_p13, %p1443_p10 }
 0x3a0   : > { %1453 = shalt.err (!%p1450_p0)
}
 0x3a1   : > { %s1454_s29 = scalar_lea.hbm %s1978_s11, 128 }
 0x3a2   : > { %p1455_p1 = scmp.ne.s32.totalorder %s1978_s11, %s1454_s29  ;;  %p1460_p4 = scmp.lt.u32.totalorder %s1454_s29, %s1978_s11 }
 0x3a4   : > { %p1456_p2 = pnand %p1455_p1, %p1935_p7 }
 0x3a6   : > { %p1457_p3 = pneg %p1456_p2 }
 0x3a8   : > { %p1462_p5 = pnand %p1460_p4, %p1457_p3 }
 0x3aa   : > { %1465 = shalt.err (!%p1462_p5)
}
 0x3ab   : > { %1392 = dma.vmem_to_hbm [thread:$0]  (%p1935_p7), %s1078_s22, 128, %s1978_s11, [#allocation11]  }
 0x3ac PF: > { %p1400_p6 = scmp.ge.s32.totalorder %s1492_s25, 2  ;;  %p1401_p8 = scmp.eq.s32.totalorder %s1149_s3, 1 }
 0x3ae   : > { %p1396_p9 = pnand %p1401_p8, %p1400_p6 }
 0x3b0   : > { %1479 = dma.done.wait (!%p1396_p9), [#allocation11], 128  }
 0x3b1   : > { %1481 = vsyncadd (!%p1396_p9), [#allocation11], 4294967168  ;;  %s30_s25 = sadd.s32 1, %s1492_s25   ;;  %s1982_s23 = smov %s1488_s24 }
 0x3b2   : > { %p27_p10 = scmp.ge.s32.totalorder %s30_s25, 4   ;;  %s1983_s24 = smov %s1985_s4 }
 0x3b4   :  { %29 = sbr.rel (!%p27_p10) target bundleno = 7 (0x7), region = 113 }
 0x3bb   :  { %1095 = vsyncpa [#allocation11], 1 }
 0x3bc   :  { %1097 = vsyncpa [#allocation11 + $0x1], 1 }

</bundles_post_ra>
